<compile_context>
chip_gen: v7x
topology: tpu7x:2x2x1
jax: 0.10.0
libtpu: 0.0.40
codegen_flags: <defaults>
</compile_context>

<pallas_src>
import math

import jax
import jax.numpy as jnp
import numpy as np
from jax import lax
from jax.experimental import pallas as pl
from jax.experimental.pallas import tpu as pltpu

L = 4
A = 2 * L * L            # 32, max(H.shape)
B_DIM = 2 * L * L - 2    # 30, min(H.shape)
M_PREP = 2 * L * L       # rows of H_prep (synthetic; only needs A columns)
LAMBDA_A = 0.1
PI_HALF = math.pi / 2.0
LANE = 128


def _make_loss_kernel(valid_cols, neg_lambda_over_n, inv_r):
    """Kernel closure over compile-time scalars (no in-kernel divides)."""

    def kernel(hp_ref, tmp_ref, res_ref, o_ref):
        hp = hp_ref[...]      # (M, A)   float32, resident
        tmp = tmp_ref[...]    # (A, P)   tmp tiled per result; 0.0 in padded lanes
        res = res_ref[...]    # (A, P)   results slab;         1.0 in padded lanes

        # term a: ONE MXU matmul over every (result, batch) column at once.
        loss_a = jnp.dot(hp, res + tmp, preferred_element_type=jnp.float32)
        abs_sin = jnp.abs(jnp.sin(loss_a * PI_HALF))
        lane_id = lax.broadcasted_iota(jnp.int32, abs_sin.shape, 1)
        term_a = jnp.sum(jnp.where(lane_id < valid_cols, abs_sin, 0.0))

        # term b: padded lanes contribute exactly 0 (res=1, tmp=0 => both logs 0).
        # NOTE: log1p(-tmp) would be more accurate for tmp ~ 1; jnp.log(1-tmp)
        # kept to match the PyTorch original bit-for-bit in semantics.
        loss_b = (1.0 - tmp) * jnp.log(res) + res * jnp.log(1.0 - tmp)
        term_b = neg_lambda_over_n * jnp.sum(loss_b)

        total = (term_a + term_b) * inv_r
        o_ref[...] = jnp.full((1, 1), total, dtype=jnp.float32)

    return kernel


def loss_func_pallas(results_list, y, H_prep):
    """results_list: list of (N, 1) arrays; y: (N, 1); H_prep: (M_PREP, A).

    Returns a (1, 1) float32 array (matching the PyTorch module's output shape).
    """
    a = A
    n = y.shape[0]
    assert n % a == 0
    batch = n // a
    r = len(results_list)
    valid = r * batch
    p = pl.cdiv(valid, LANE) * LANE          # lane-dense width (multiple of 128)
    pad = p - valid

    # Single bulk reshape/transpose: (R, N, 1) -> (A, R*batch).
    # column (i*batch + j) of the slab = results[i][j*a:(j+1)*a, 0]
    res_slab = (
        jnp.stack(results_list)
        .reshape(r, batch, a)
        .transpose(2, 0, 1)
        .reshape(a, valid)
        .astype(jnp.float32)
    )
    tmp = y.reshape(batch, a).T.astype(jnp.float32)   # (A, batch)
    tmp_slab = jnp.tile(tmp, (1, r))                  # (A, R*batch)

    # Pad lanes up to a multiple of 128. res pad = 1, tmp pad = 0 makes the
    # log-term exactly zero in padded lanes; |sin| term is masked in-kernel.
    res_slab = jnp.pad(res_slab, ((0, 0), (0, pad)), constant_values=1.0)
    tmp_slab = jnp.pad(tmp_slab, ((0, 0), (0, pad)), constant_values=0.0)

    hprep = H_prep.astype(jnp.float32)
    m = hprep.shape[0]

    neg_lambda_over_n = -LAMBDA_A / float(a * batch)
    inv_r = 1.0 / float(r)
    kernel = _make_loss_kernel(valid, neg_lambda_over_n, inv_r)

    cost = pl.CostEstimate(
        flops=2 * m * a * p + 8 * a * p,
        transcendentals=m * p + 2 * a * p,          # sin + two logs
        bytes_accessed=4 * (m * a + 2 * a * p + 1),
    )

    out = pl.pallas_call(
        kernel,
        out_shape=jax.ShapeDtypeStruct((1, 1), jnp.float32),
        in_specs=[
            pl.BlockSpec(memory_space=pltpu.MemorySpace.VMEM),   # H_prep (M, A)
            pl.BlockSpec(memory_space=pltpu.MemorySpace.VMEM),   # tmp slab (A, P)
            pl.BlockSpec(memory_space=pltpu.MemorySpace.VMEM),   # res slab (A, P)
        ],
        out_specs=pl.BlockSpec(memory_space=pltpu.MemorySpace.VMEM),
        cost_estimate=cost,
    )(hprep, tmp_slab, res_slab)
    return out


def _loss_func_ref(results_list, y, H_prep):
    """Pure-JAX reference mirroring the PyTorch forward."""
    a = A
    n = y.shape[0]
    batch = n // a
    tmp = y.reshape(batch, a).T.astype(jnp.float32)
    total = jnp.zeros((1, 1), jnp.float32)
    for r_vec in results_list:
        res = r_vec.reshape(batch, a).T.astype(jnp.float32)
        loss_a = H_prep.astype(jnp.float32) @ (res + tmp)
        loss_b = (1.0 - tmp) * jnp.log(res) + res * jnp.log(1.0 - tmp)
        total = total + jnp.sum(jnp.abs(jnp.sin(loss_a * PI_HALF))) \
                      + LAMBDA_A * jnp.sum(loss_b) / (-1.0 * loss_b.size)
    return total / len(results_list)


if __name__ == "__main__":
    key = jax.random.PRNGKey(0)
    k_hp, k_y, k_res = jax.random.split(key, 3)

    # Deterministic synthetic "parity-check prep" matrix (binary, float32).
    # TODO(synk): real H_prep comes from error_generate.H_Prep(H.T); synthesized here.
    H_prep = (jax.random.uniform(k_hp, (M_PREP, A)) < 0.5).astype(jnp.float32)

    batch = 2                      # number of codewords concatenated in y
    n_results = 3                  # len(results) (e.g. per-iteration decoder outputs)
    N = batch * A                  # length of each column vector

    # Values strictly inside (0, 1) so log(res) / log(1 - tmp) are finite.
    y = jax.random.uniform(k_y, (N, 1), minval=0.05, maxval=0.95)
    res_keys = jax.random.split(k_res, n_results)
    results = [jax.random.uniform(k, (N, 1), minval=0.05, maxval=0.95)
               for k in res_keys]

    out = loss_func_pallas(results, y, H_prep)
    out = jax.block_until_ready(out)

    ref = _loss_func_ref(results, y, H_prep)
    assert out.shape == (1, 1)
    assert np.allclose(np.asarray(out), np.asarray(ref), rtol=1e-5, atol=1e-5)

    print("KERNEL_OK")
</pallas_src>

<mosaic_0001>
module attributes {stable_mosaic.version = 11 : i64} {
  func.func @kernel(%arg0: memref<32x32xf32, #tpu.memory_space<vmem>>, %arg1: memref<32x128xf32, #tpu.memory_space<vmem>>, %arg2: memref<32x128xf32, #tpu.memory_space<vmem>>, %arg3: memref<1x1xf32, #tpu.memory_space<vmem>>) attributes {dimension_semantics = [], scalar_prefetch = 0 : i64, scratch_operands = 0 : i64, tpu.core_type = #tpu.core_type<tc>} {
    %c0 = arith.constant 0 : index
    %c0_0 = arith.constant 0 : index
    %0 = vector.load %arg0[%c0, %c0_0] : memref<32x32xf32, #tpu.memory_space<vmem>>, vector<32x32xf32>
    %c0_1 = arith.constant 0 : index
    %c0_2 = arith.constant 0 : index
    %1 = vector.load %arg1[%c0_1, %c0_2] : memref<32x128xf32, #tpu.memory_space<vmem>>, vector<32x128xf32>
    %c0_3 = arith.constant 0 : index
    %c0_4 = arith.constant 0 : index
    %2 = vector.load %arg2[%c0_3, %c0_4] : memref<32x128xf32, #tpu.memory_space<vmem>>, vector<32x128xf32>
    %3 = arith.addf %2, %1 : vector<32x128xf32>
    %cst = arith.constant dense<0.000000e+00> : vector<32x128xf32>
    %4 = tpu.matmul %0, %3, %cst {dimension_numbers = #tpu.dot_dimension_numbers<[1], [0], [0], [1], [0, 0, 1, 1], [], []>} : vector<32x32xf32>, vector<32x128xf32>, vector<32x128xf32> -> vector<32x128xf32>
    %cst_5 = arith.constant 1.57079637 : f32
    %5 = vector.broadcast %cst_5 : f32 to vector<32x128xf32>
    %6 = arith.mulf %4, %5 : vector<32x128xf32>
    %7 = math.sin %6 : vector<32x128xf32>
    %8 = math.absf %7 : vector<32x128xf32>
    %9 = tpu.iota {dimensions = array<i32: 1>} : vector<32x128xi32>
    %c6_i32 = arith.constant 6 : i32
    %10 = vector.broadcast %c6_i32 : i32 to vector<32x128xi32>
    %11 = arith.cmpi slt, %9, %10 : vector<32x128xi32>
    %cst_6 = arith.constant 0.000000e+00 : f32
    %12 = vector.broadcast %cst_6 : f32 to vector<32x128xf32>
    %13 = arith.select %11, %8, %12 : vector<32x128xi1>, vector<32x128xf32>
    %14 = vector.shape_cast %13 : vector<32x128xf32> to vector<1x32x128xf32>
    %cst_7 = arith.constant dense<0.000000e+00> : vector<1xf32>
    %15 = vector.multi_reduction <add>, %14, %cst_7 [1, 2] : vector<1x32x128xf32> to vector<1xf32>
    %16 = vector.shape_cast %15 : vector<1xf32> to vector<1x1x1xf32>
    %17 = vector.extract %16[0, 0, 0] : f32 from vector<1x1x1xf32>
    %cst_8 = arith.constant 1.000000e+00 : f32
    %18 = vector.broadcast %cst_8 : f32 to vector<32x128xf32>
    %19 = arith.subf %18, %1 : vector<32x128xf32>
    %20 = math.log %2 : vector<32x128xf32>
    %21 = arith.mulf %19, %20 : vector<32x128xf32>
    %cst_9 = arith.constant 1.000000e+00 : f32
    %22 = vector.broadcast %cst_9 : f32 to vector<32x128xf32>
    %23 = arith.subf %22, %1 : vector<32x128xf32>
    %24 = math.log %23 : vector<32x128xf32>
    %25 = arith.mulf %2, %24 : vector<32x128xf32>
    %26 = arith.addf %21, %25 : vector<32x128xf32>
    %27 = vector.shape_cast %26 : vector<32x128xf32> to vector<1x32x128xf32>
    %cst_10 = arith.constant dense<0.000000e+00> : vector<1xf32>
    %28 = vector.multi_reduction <add>, %27, %cst_10 [1, 2] : vector<1x32x128xf32> to vector<1xf32>
    %29 = vector.shape_cast %28 : vector<1xf32> to vector<1x1x1xf32>
    %30 = vector.extract %29[0, 0, 0] : f32 from vector<1x1x1xf32>
    %cst_11 = arith.constant -1.562500e-03 : f32
    %31 = arith.mulf %cst_11, %30 : f32
    %32 = arith.addf %17, %31 : f32
    %cst_12 = arith.constant 0.333333343 : f32
    %33 = arith.mulf %32, %cst_12 : f32
    %34 = vector.broadcast %33 : f32 to vector<1x1xf32>
    %c0_13 = arith.constant 0 : index
    %c0_14 = arith.constant 0 : index
    %35 = vector.load %arg3[%c0_13, %c0_14] : memref<1x1xf32, #tpu.memory_space<vmem>>, vector<1x1xf32>
    tpu.vector_store %arg3[%c0_13, %c0_14], %34 {strides = array<i32>} : memref<1x1xf32, #tpu.memory_space<vmem>>, vector<1x1xf32>,
    return
  }
}

</mosaic_0001>

<bundles_post_ra>
// kernel: tpu_custom_call.1
= control target key start
LH: loop header
LB: loop body
LE: loop exit
PB: predicated region body
PF: predicated region fallthrough
CT: control target
= control target key end

     0   :  { %8 = vsyncpa [#allocation3], 0  ;;  %s1340_s0 = inlined_call_operand.hbm [shape: f32[32,32], index: 0, kind: input, shape index: {}]   ;;  %s1341_s1 = inlined_call_operand.hbm [shape: f32[32,128], index: 1, kind: input, shape index: {}]   ;;  %s1342_s2 = inlined_call_operand.hbm [shape: f32[32,128], index: 2, kind: input, shape index: {}]   ;;  %s1343_s3 = inlined_call_operand.hbm [shape: f32[1,1], index: 3, kind: output, shape index: {}]  }
   0x1   :  { %9 = vsyncpa [#allocation6], 0 }
   0x2   :  { %10 = vsyncpa [#allocation4], 0  ;;  %s891_s12 = smov [#allocation5]   ;;  %s892_s14 = smov [#allocation2]  }
   0x3   :  { %s28_s13 = sshll.u32 %s891_s12, 4  ;;  %s16_s15 = sshll.u32 %s892_s14, 4  ;;  %s29_s13 = int_to_ptr.vmem [resolvable:$true] %s28_s13  ;;  %s923_s15 = int_to_ptr.vmem [resolvable:$true] %s16_s15 }
   0x4   :  { %s797_s18 = scalar_lea.hbm %s1341_s1, 512 }
   0x5   :  { %p798_p0 = scmp.ne.s32.totalorder %s1341_s1, %s797_s18  ;;  %p801_p1 = scmp.lt.u32.totalorder %s797_s18, %s1341_s1 }
   0x7   :  { %p803_p2 = pnand %p801_p1, %p798_p0 }
   0x9   :  { %806 = shalt.err (!%p803_p2)
}
   0xa   :  { %s807_s23 = scalar_lea.vmem %s29_s13, 512  ;;  %p812_p4 = scmp.lt.s32.totalorder %s29_s13, %s29_s13 }
   0xb   :  { %p808_p3 = scmp.ne.s32.totalorder %s29_s13, %s807_s23  ;;  %p813_p5 = scmp.lt.s32.totalorder %s807_s23, %s807_s23 }
   0xd   :  { %p814_p6 = por %p813_p5, %p812_p4 }
   0xf   :  { %p815_p7 = pnand %p814_p6, %p808_p3 }
  0x11   :  { %818 = shalt.err (!%p815_p7)
}
  0x12   :  { %s893_s24 = smov 128   ;;  %s894_s25 = smov 8  }
  0x13   :  { %34 = dma.hbm_to_vmem [thread:$0]  %s1341_s1, 512, %s29_s13, [#allocation6], %s893_s24, %s893_s24, %s894_s25  }
  0x14   :  { %s819_s30 = scalar_lea.hbm %s1340_s0, 512 }
  0x15   :  { %p820_p8 = scmp.ne.s32.totalorder %s1340_s0, %s819_s30  ;;  %p823_p9 = scmp.lt.u32.totalorder %s819_s30, %s1340_s0 }
  0x17   :  { %p825_p10 = pnand %p823_p9, %p820_p8 }
  0x19   :  { %828 = shalt.err (!%p825_p10)
}
  0x1a   :  { %s829_s8 = scalar_lea.vmem %s923_s15, 512  ;;  %p834_p12 = scmp.lt.s32.totalorder %s923_s15, %s923_s15 }
  0x1b   :  { %p830_p11 = scmp.ne.s32.totalorder %s923_s15, %s829_s8  ;;  %p835_p13 = scmp.lt.s32.totalorder %s829_s8, %s829_s8 }
  0x1d   :  { %p836_p0 = por %p835_p13, %p834_p12 }
  0x1f   :  { %p837_p1 = pnand %p836_p0, %p830_p11 }
  0x21   :  { %840 = shalt.err (!%p837_p1)
}
  0x22   :  { %22 = dma.hbm_to_vmem [thread:$0]  %s1340_s0, 512, %s923_s15, [#allocation3], %s893_s24, %s893_s24, %s894_s25  }
  0x23   :  { %s895_s10 = smov [#allocation7]   ;;  %s841_s14 = scalar_lea.hbm %s1342_s2, 512 }
  0x24   :  { %s40_s11 = sshll.u32 %s895_s10, 4  ;;  %p842_p2 = scmp.ne.s32.totalorder %s1342_s2, %s841_s14  ;;  %s41_s11 = int_to_ptr.vmem [resolvable:$true] %s40_s11 }
  0x25   :  { %p845_p3 = scmp.lt.u32.totalorder %s841_s14, %s1342_s2 }
  0x27   :  { %p847_p4 = pnand %p845_p3, %p842_p2 }
  0x29   :  { %850 = shalt.err (!%p847_p4)
}
  0x2a   :  { %s851_s20 = scalar_lea.vmem %s41_s11, 512  ;;  %p856_p6 = scmp.lt.s32.totalorder %s41_s11, %s41_s11 }
  0x2b   :  { %p852_p5 = scmp.ne.s32.totalorder %s41_s11, %s851_s20  ;;  %p857_p7 = scmp.lt.s32.totalorder %s851_s20, %s851_s20 }
  0x2d   :  { %p858_p8 = por %p857_p7, %p856_p6 }
  0x2f   :  { %p859_p9 = pnand %p858_p8, %p852_p5 }
  0x31   :  { %862 = shalt.err (!%p859_p9)
}
  0x32   :  { %46 = dma.hbm_to_vmem [thread:$0]  %s1342_s2, 512, %s41_s11, [#allocation6], %s893_s24, %s893_s24, %s894_s25  }
  0x33   :  { %885 = dma.done.wait [#allocation3], 512  }
  0x34   :  { %886 = vsyncadd [#allocation3], 4294966784 }
  0x35   :  { %887 = dma.done.wait [#allocation6], 1024  }
  0x36   :  { %888 = vsyncadd [#allocation6], 4294966272  ;;  %v975_v0 = vld [vmem:[#allocation5] sm:$0xff]  ;;  %v977_v1 = vld [vmem:[#allocation5 + $0x8] sm:$0xff]  ;;  %vm72_vm0 = vcmask 261120   ;;  %s902_s24 = smov [#allocation8]  }
  0x37   :  { %v979_v2 = vld [vmem:[#allocation7] sm:$0xff]  ;;  %v981_v3 = vld [vmem:[#allocation7 + $0x8] sm:$0xff]  ;;  %v985_v5 = vld [vmem:[#allocation5 + $0x10] sm:$0xff]  ;;  %v896_v58 = vmov 683565275   ;;  %s669_s25 = sshll.u32 %s902_s24, 4  ;;  %s670_s25 = int_to_ptr.vmem [resolvable:$true] %s669_s25 }
  0x38   :  { %v68_v4 = vadd.f32 %v979_v2, %v975_v0  ;;  %v987_v6 = vld [vmem:[#allocation5 + $0x18] sm:$0xff]  ;;  %v69_v7 = vadd.f32 %v981_v3, %v977_v1  ;;  %v991_v8 = vld [vmem:[#allocation7 + $0x10] sm:$0xff]  ;;  %v56_v10 = vld [vmem:[#allocation2] sm:$0xff]  ;;  %v897_v60 = vmov 2475754826   ;;  %s863_s27 = scalar_lea.vmem %s670_s25, 16  ;;  %p868_p11 = scmp.lt.s32.totalorder %s670_s25, %s670_s25 }
  0x39   :  { %v993_v9 = vld [vmem:[#allocation7 + $0x18] sm:$0xff]  ;;  %v70_v11 = vadd.f32 %v991_v8, %v985_v5  ;;  %715 = vmatprep.mubr.msk.f32.mxu0 %vm72_vm0, %v56_v10  ;;  %v58_v13 = vld [vmem:[#allocation2 + $0x10] sm:$0xff]  ;;  %v57_v16 = vld [vmem:[#allocation2 + $0x8] sm:$0xff]  ;;  %v898_v63 = vmov 2131351028   ;;  %p864_p10 = scmp.ne.s32.totalorder %s670_s25, %s863_s27  ;;  %s867_s28 = scalar_lea.vmem %s670_s25, 32 }
  0x3a   :  { %v71_v12 = vadd.f32 %v993_v9, %v987_v6  ;;  %v721_v14 = vpack.c.bf16 %v69_v7, %v68_v4  ;;  %718 = vmatprep.mubr.msk.f32.mxu1 %vm72_vm0, %v58_v13  ;;  %v59_v17 = vld [vmem:[#allocation2 + $0x18] sm:$0xff]  ;;  %v899_v7 = vmov 2102212464   ;;  %p869_p12 = scmp.lt.s32.totalorder %s867_s28, %s863_s27 }
  0x3c   :  { %v725_v15 = vpack.c.bf16 %v71_v12, %v70_v11  ;;  %722 = vmatprep.subr.bf16.mxu0 %v721_v14  ;;  %729 = vmatprep.subr.bf16.mxu1 %v721_v14  ;;  %v900_v11 = vmov 920167782   ;;  %p870_p13 = por %p869_p12, %p868_p11 }
  0x3d   :  { %724 = vmatpush3.bf16.msra.mxu0 %v721_v14  ;;  %731 = vmatpush3.bf16.msra.mxu1 %v721_v14 }
  0x3e   :  { %726 = vmatprep.subr.bf16.mxu0 %v725_v15  ;;  %730 = vmatprep.subr.bf16.mxu1 %v725_v15  ;;  %p871_p0 = pnand %p870_p13, %p864_p10 }
  0x41   :  { %728 = vmatpush3.bf16.msra.mxu0 %v725_v15  ;;  %732 = vmatpush3.bf16.msra.mxu1 %v725_v15 }
  0x44   :  { %716 = vmatmul.mubr.msk.f32.vlgmr.msra.gmra.mrb[0].mxu0 %vm72_vm0, %v57_v16  ;;  %719 = vmatmul.mubr.msk.f32.vlgmr.msra.gmra.mrb[0].mxu1 %vm72_vm0, %v59_v17 }
 0x117   :  { %v717_v18 = vpop.f32.mrb[0].mxu0  ;;  %v720_v19 = vpop.f32.mrb[0].mxu1 }
 0x118   :  { %v1003_v20 = vmul.f32 1.5707964, %v717_v18  ;;  %v1005_v21 = vmul.f32 1.5707964, %v720_v19  ;;  %v151_v22 = vpop.f32.mrb[1].mxu0  ;;  %v161_v23 = vpop.f32.mrb[1].mxu1 }
 0x119   :  { %v1007_v24 = vmul.f32 1.5707964, %v151_v22  ;;  %v1019_v35 = vmul.f32 1.5707964, %v161_v23  ;;  %v901_v18 = vmov 1326507024  }
 0x11a   :  { %v278_v25 = vand.u32 2147483647, %v1003_v20  ;;  %v281_v26 = vand.u32 2139095040, %v1003_v20  ;;  %v486_v27 = vand.u32 2147483647, %v1005_v21  ;;  %v489_v28 = vand.u32 2139095040, %v1005_v21 }
 0x11b   :  { %v174_v29 = vand.u32 2147483647, %v1007_v24  ;;  %v177_v32 = vand.u32 2139095040, %v1007_v24  ;;  %v385_v45 = vand.u32 2139095040, %v1019_v35 }
 0x11c   :  { %v282_v30 = vshrl.u32 %v281_v26, 23  ;;  %v285_v31 = vand.u32 8388607, %v278_v25  ;;  %v490_v33 = vshrl.u32 %v489_v28, 23  ;;  %v493_v34 = vand.u32 8388607, %v486_v27 }
 0x11d   :  { %v178_v37 = vshrl.u32 %v177_v32, 23  ;;  %v1023_v40 = vand.u32 8388607, %v174_v29  ;;  %v1033_v56 = vshrl.u32 %v385_v45, 23 }
 0x11e   :  { %v687_v36 = vadd.s32 4294967169, %v282_v30  ;;  %v286_v38 = vor.u32 8388608, %v285_v31  ;;  %v695_v39 = vadd.s32 4294967169, %v490_v33  ;;  %v494_v43 = vor.u32 8388608, %v493_v34 }
 0x11f   :  { %v683_v42 = vadd.s32 4294967169, %v178_v37  ;;  %v182_v49 = vor.u32 8388608, %v1023_v40 }
 0x120   :  { %v288_v41 = vadd.s32 1, %v687_v36  ;;  %v496_v44 = vadd.s32 1, %v695_v39  ;;  %v1026_v48 = vshll.u32 %v286_v38, 8  ;;  %v1031_v55 = vshll.u32 %v494_v43, 8 }
 0x121   :  { %v184_v46 = vadd.s32 1, %v683_v42 }
 0x122   :  { %vm289_vm1 = vcmp.gt.s32.totalorder %v288_v41, 0  ;;  %vm497_vm2 = vcmp.gt.s32.totalorder %v496_v44, 0 }
 0x123   :  { %v290_v47 = vsel %vm289_vm1, %v288_v41, 0  ;;  %v498_v52 = vsel %vm497_vm2, %v496_v44, 0  ;;  %vm185_vm3 = vcmp.gt.s32.totalorder %v184_v46, 0 }
 0x124   :  { %v291_v50 = vshrl.u32 %v290_v47, 5  ;;  %v292_v51 = vand.u32 31, %v290_v47  ;;  %v1029_v53 = vshrl.u32 %v498_v52, 5  ;;  %v500_v54 = vand.u32 31, %v498_v52 }
 0x125   :  { %v1037_v62 = vsel %vm185_vm3, %v184_v46, 0 }
 0x126   :  { %v293_v57 = vsub.s32 32, %v292_v51  ;;  %v295_v59 = vshll.u32 %v896_v58, %v292_v51  ;;  %v298_v61 = vshll.u32 %v897_v60, %v292_v51  ;;  %v301_v4 = vshll.u32 %v898_v63, %v292_v51 }
 0x127   :  { %v304_v10 = vshll.u32 %v899_v7, %v292_v51  ;;  %v307_v12 = vshll.u32 %v900_v11, %v292_v51  ;;  %vm310_vm4 = vcmp.lt.s32.totalorder %v291_v50, 1  ;;  %vm311_vm5 = vcmp.lt.s32.totalorder %v291_v50, 2 }
 0x128   :  { %v296_v13 = vshrl.u32 %v897_v60, %v293_v57  ;;  %v299_v14 = vshrl.u32 %v898_v63, %v293_v57  ;;  %v302_v15 = vshrl.u32 %v899_v7, %v293_v57  ;;  %v294_v16 = vshrl.u32 %v896_v58, %v293_v57 }
 0x129   :  { %v305_v17 = vshrl.u32 %v900_v11, %v293_v57  ;;  %v308_v19 = vshrl.u32 %v901_v18, %v293_v57  ;;  %vm312_vm6 = vcmp.lt.s32.totalorder %v291_v50, 3  ;;  %v501_v28 = vsub.s32 32, %v500_v54 }
 0x12a   :  { %v297_v22 = vor.u32 %v296_v13, %v295_v59  ;;  %v300_v23 = vor.u32 %v299_v14, %v298_v61  ;;  %v303_v26 = vor.u32 %v302_v15, %v301_v4  ;;  %vm313_vm7 = vcmp.lt.s32.totalorder %v291_v50, 4 }
 0x12b   :  { %v306_v30 = vor.u32 %v305_v17, %v304_v10  ;;  %v309_v31 = vor.u32 %v308_v19, %v307_v12  ;;  %v503_v32 = vshll.u32 %v896_v58, %v500_v54  ;;  %v506_v42 = vshll.u32 %v897_v60, %v500_v54 }
 0x12c   :  { %v314_v33 = vsel %vm310_vm4, %v294_v16, %v297_v22  ;;  %v315_v34 = vsel %vm313_vm7, %v303_v26, 2102212464  ;;  %v318_v36 = vsel %vm310_vm4, %v297_v22, %v300_v23  ;;  %v322_v37 = vsel %vm310_vm4, %v300_v23, %v303_v26 }
 0x12d   :  { %v316_v38 = vsel %vm312_vm6, %v300_v23, %v315_v34  ;;  %v319_v39 = vsel %vm313_vm7, %v306_v30, 920167782  ;;  %v323_v41 = vsel %vm313_vm7, %v309_v31, 1326507024  ;;  %v502_v45 = vshrl.u32 %v896_v58, %v501_v28 }
 0x12e   :  { %v320_v43 = vsel %vm312_vm6, %v303_v26, %v319_v39  ;;  %v324_v44 = vsel %vm312_vm6, %v306_v30, %v323_v41  ;;  %v504_v46 = vshrl.u32 %v897_v60, %v501_v28  ;;  %v317_v47 = vsel %vm311_vm5, %v314_v33, %v316_v38 }
 0x12f   :  { %v321_v51 = vsel %vm311_vm5, %v318_v36, %v320_v43  ;;  %v325_v52 = vsel %vm311_vm5, %v322_v37, %v324_v44  ;;  %v507_v57 = vshrl.u32 %v898_v63, %v501_v28  ;;  %v509_v14 = vshll.u32 %v898_v63, %v500_v54 }
 0x130   :  { %v1063_v59 = vmul.u32.u64.low %v1026_v48, %v325_v52  ;;  %v1064_v61 = vmul.u32.u64.high %v1026_v48, %v325_v52, %v1063_v59  ;;  %v1067_v4 = vmul.u32.u64.low %v1026_v48, %v321_v51  ;;  %v1068_v10 = vmul.u32.u64.high %v1026_v48, %v321_v51, %v1067_v4 }
 0x131   :  { %v505_v12 = vor.u32 %v504_v46, %v503_v32  ;;  %v508_v13 = vor.u32 %v507_v57, %v506_v42  ;;  %v510_v15 = vshrl.u32 %v899_v7, %v501_v28  ;;  %v512_v50 = vshll.u32 %v899_v7, %v500_v54 }
 0x132   :  { %v513_v16 = vshrl.u32 %v900_v11, %v501_v28  ;;  %v515_v17 = vshll.u32 %v900_v11, %v500_v54  ;;  %v516_v19 = vshrl.u32 %v901_v18, %v501_v28  ;;  %v333_v22 = vmul.u32 %v1026_v48, %v317_v47 }
 0x133   :  { %v511_v23 = vor.u32 %v510_v15, %v509_v14  ;;  %vm518_vm8 = vcmp.lt.s32.totalorder %v1029_v53, 1  ;;  %vm519_vm9 = vcmp.lt.s32.totalorder %v1029_v53, 2  ;;  %vm335_vm10 = vc.u32 %v1064_v61, %v1067_v4 }
 0x134   :  { %v336_v26 = vadd.s32 1, %v1068_v10  ;;  %v514_v30 = vor.u32 %v513_v16, %v512_v50  ;;  %vm520_vm11 = vcmp.lt.s32.totalorder %v1029_v53, 3  ;;  %v517_v31 = vor.u32 %v516_v19, %v515_v17 }
 0x135   :  { %vm521_vm12 = vcmp.lt.s32.totalorder %v1029_v53, 4  ;;  %v522_v54 = vsel %vm518_vm8, %v502_v45, %v505_v12  ;;  %v526_v28 = vsel %vm518_vm8, %v505_v12, %v508_v13  ;;  %v530_v34 = vsel %vm518_vm8, %v508_v13, %v511_v23 }
 0x136   :  { %v337_v48 = vsel %vm335_vm10, %v336_v26, %v1068_v10  ;;  %v523_v32 = vsel %vm521_vm12, %v511_v23, 2102212464  ;;  %v527_v33 = vsel %vm521_vm12, %v514_v30, 920167782  ;;  %v531_v39 = vsel %vm521_vm12, %v517_v31, 1326507024 }
 0x137   :  { %v338_v36 = vadd.s32 %v337_v48, %v333_v22  ;;  %v524_v37 = vsel %vm520_vm11, %v508_v13, %v523_v32  ;;  %v528_v38 = vsel %vm520_vm11, %v511_v23, %v527_v33  ;;  %v532_v43 = vsel %vm520_vm11, %v514_v30, %v531_v39 }
 0x138   :  { %v525_v41 = vsel %vm519_vm9, %v522_v54, %v524_v37  ;;  %v529_v42 = vsel %vm519_vm9, %v526_v28, %v528_v38  ;;  %v187_v44 = vshrl.u32 %v1037_v62, 5  ;;  %v533_v46 = vsel %vm519_vm9, %v530_v34, %v532_v43 }
 0x139   :  { %v339_v45 = vadd.s32 536870912, %v338_v36  ;;  %v1094_v47 = vmul.u32.u64.low %v1031_v55, %v529_v42  ;;  %v1095_v51 = vmul.u32.u64.high %v1031_v55, %v529_v42, %v1094_v47  ;;  %v188_v59 = vand.u32 31, %v1037_v62 }
 0x13a   :  { %v1099_v52 = vmul.u32.u64.low %v1031_v55, %v533_v46  ;;  %v1100_v57 = vmul.u32.u64.high %v1031_v55, %v533_v46, %v1099_v52  ;;  %v1107_v12 = vshll.u32 %v182_v49, 8  ;;  %v691_v53 = vadd.s32 4294967169, %v1033_v56 }
 0x13b   :  { %v1103_v10 = vshrl.u32 %v339_v45, 30  ;;  %v541_v13 = vmul.u32 %v1031_v55, %v525_v41  ;;  %v189_v14 = vsub.s32 32, %v188_v59  ;;  %vm206_vm13 = vcmp.lt.s32.totalorder %v187_v44, 1 }
 0x13c   :  { %vm208_vm14 = vcmp.lt.s32.totalorder %v187_v44, 3  ;;  %v544_v50 = vadd.s32 1, %v1095_v51  ;;  %v191_v16 = vshll.u32 %v896_v58, %v188_v59  ;;  %v194_v62 = vshll.u32 %v897_v60, %v188_v59 }
 0x13d   :  { %v341_v15 = vshll.u32 %v1103_v10, 30  ;;  %vm207_vm15 = vcmp.lt.s32.totalorder %v187_v44, 2  ;;  %vm543_vm0 = vc.u32 %v1100_v57, %v1094_v47  ;;  %v192_v40 = vshrl.u32 %v897_v60, %v189_v14 }
 0x13e   :  { %v197_v49 = vshll.u32 %v898_v63, %v188_v59  ;;  %v200_v55 = vshll.u32 %v899_v7, %v188_v59  ;;  %v545_v17 = vsel %vm543_vm0, %v544_v50, %v1095_v51  ;;  %v190_v19 = vshrl.u32 %v896_v58, %v189_v14 }
 0x13f   :  { %v342_v56 = vsub.s32 %v338_v36, %v341_v15  ;;  %v195_v22 = vshrl.u32 %v898_v63, %v189_v14  ;;  %v546_v23 = vadd.s32 %v545_v17, %v541_v13  ;;  %v193_v26 = vor.u32 %v192_v40, %v191_v16 }
 0x140   :  { %v198_v30 = vshrl.u32 %v899_v7, %v189_v14  ;;  %v201_v31 = vshrl.u32 %v900_v11, %v189_v14  ;;  %v203_v48 = vshll.u32 %v900_v11, %v188_v59  ;;  %v204_v32 = vshrl.u32 %v901_v18, %v189_v14 }
 0x141   :  { %v344_v54 = vsub.s32 0, %v342_v56  ;;  %v196_v28 = vor.u32 %v195_v22, %v194_v62  ;;  %v547_v33 = vadd.s32 536870912, %v546_v23  ;;  %vm209_vm1 = vcmp.lt.s32.totalorder %v187_v44, 4 }
 0x142   :  { %v199_v34 = vor.u32 %v198_v30, %v197_v49  ;;  %v202_v36 = vor.u32 %v201_v31, %v200_v55  ;;  %v205_v38 = vor.u32 %v204_v32, %v203_v48  ;;  %v210_v39 = vsel %vm206_vm13, %v190_v19, %v193_v26 }
 0x143   :  { %v688_v37 = vmin.u32 %v344_v54, %v342_v56  ;;  %v214_v41 = vsel %vm206_vm13, %v193_v26, %v196_v28  ;;  %v1129_v42 = vshrl.u32 %v547_v33, 30  ;;  %v392_v26 = vadd.s32 1, %v691_v53 }
 0x144   :  { %v211_v43 = vsel %vm209_vm1, %v199_v34, 2102212464  ;;  %v215_v45 = vsel %vm209_vm1, %v202_v36, 920167782  ;;  %v218_v46 = vsel %vm206_vm13, %v196_v28, %v199_v34  ;;  %v219_v13 = vsel %vm209_vm1, %v205_v38, 1326507024 }
 0x145   :  { %v346_v51 = vclz %v688_v37  ;;  %v212_v52 = vsel %vm208_vm14, %v196_v28, %v211_v43  ;;  %v216_v59 = vsel %vm208_vm14, %v199_v34, %v215_v45  ;;  %v549_v14 = vshll.u32 %v1129_v42, 30 }
 0x146   :  { %v217_v15 = vsel %vm207_vm15, %v214_v41, %v216_v59  ;;  %v220_v50 = vsel %vm208_vm14, %v202_v36, %v219_v13  ;;  %v213_v17 = vsel %vm207_vm15, %v210_v39, %v212_v52  ;;  %v334_v30 = vadd.s32 %v1067_v4, %v1064_v61 }
 0x147   :  { %v689_v16 = vadd.s32 4294967294, %v346_v51  ;;  %v221_v62 = vsel %vm207_vm15, %v218_v46, %v220_v50  ;;  %v1139_v40 = vmul.u32.u64.low %v1107_v12, %v217_v15  ;;  %v1140_v49 = vmul.u32.u64.high %v1107_v12, %v217_v15, %v1139_v40 }
 0x148   :  { %v1143_v55 = vsub.s32 %v546_v23, %v549_v14  ;;  %v1147_v19 = vmul.u32.u64.low %v1107_v12, %v221_v62  ;;  %v1148_v22 = vmul.u32.u64.high %v1107_v12, %v221_v62, %v1147_v19  ;;  %v382_v28 = vand.u32 2147483647, %v1019_v35 }
 0x149   :  { %vm690_vm2 = vcmp.lt.s32.totalorder %v689_v16, 0  ;;  %v229_v23 = vmul.u32 %v1107_v12, %v213_v17  ;;  %v232_v44 = vadd.s32 1, %v1140_v49  ;;  %vm393_vm4 = vcmp.gt.s32.totalorder %v392_v26, 0 }
 0x14a   :  { %v349_v31 = vsel %vm690_vm2, 0, %v689_v16  ;;  %v552_v54 = vsub.s32 0, %v1143_v55  ;;  %vm231_vm3 = vc.u32 %v1148_v22, %v1139_v40  ;;  %v394_v36 = vsel %vm393_vm4, %v392_v26, 0 }
 0x14b   :  { %v350_v48 = vsub.s32 32, %v349_v31  ;;  %v354_v32 = vsub.s32 4294967266, %v349_v31  ;;  %v351_v33 = vshll.u32 %v342_v56, %v349_v31  ;;  %v233_v4 = vsel %vm231_vm3, %v232_v44, %v1140_v49 }
 0x14c   :  { %v696_v34 = vmin.u32 %v552_v54, %v1143_v55  ;;  %v364_v37 = vsub.s32 4, %v1103_v10  ;;  %v234_v39 = vadd.s32 %v233_v4, %v229_v23  ;;  %v396_v41 = vand.u32 31, %v394_v36 }
 0x14d   :  { %v352_v53 = vshrl.u32 %v334_v30, %v350_v48  ;;  %v355_v61 = vadd.s32 127, %v354_v32  ;;  %v389_v56 = vand.u32 8388607, %v382_v28  ;;  %vm280_vm5 = vcmp.lt.s32.totalorder %v1003_v20, 0 }
 0x14e   :  { %v554_v38 = vclz %v696_v34  ;;  %v235_v45 = vadd.s32 536870912, %v234_v39  ;;  %v397_v46 = vsub.s32 32, %v396_v41  ;;  %v365_v59 = vsel %vm280_vm5, %v364_v37, %v1103_v10 }
 0x14f   :  { %v353_v12 = vor.u32 %v352_v53, %v351_v33  ;;  %v356_v43 = vshll.u32 %v355_v61, 23  ;;  %vm1171_vm6 = vcmp.le.f32.partialorder %v278_v25, 0.7853982  ;;  %v1177_v16 = vadd.s32 %v1094_v47, %v1100_v57 }
 0x150   :  { %v697_v52 = vadd.s32 4294967294, %v554_v38  ;;  %v1167_v13 = vshrl.u32 %v235_v45, 30  ;;  %v390_v49 = vor.u32 8388608, %v389_v56  ;;  %v400_v17 = vshrl.u32 %v897_v60, %v397_v46 }
 0x151   :  { %v357_v51 = vor.u32 4788187, %v356_v43  ;;  %v360_v50 = vcvt.s32.f32 %v353_v12  ;;  %v403_v19 = vshrl.u32 %v898_v63, %v397_v46  ;;  %v367_v25 = vsel %vm1171_vm6, 0, %v365_v59 }
 0x152   :  { %v237_v62 = vshll.u32 %v1167_v13, 30  ;;  %vm698_vm7 = vcmp.lt.s32.totalorder %v697_v52, 0  ;;  %v395_v30 = vshrl.u32 %v394_v36, 5  ;;  %v399_v31 = vshll.u32 %v896_v58, %v396_v41 }
 0x153   :  { %v358_v15 = vand.u32 2147483647, %v357_v51  ;;  %v406_v47 = vshrl.u32 %v899_v7, %v397_v46  ;;  %v402_v54 = vshll.u32 %v897_v60, %v396_v41  ;;  %v405_v48 = vshll.u32 %v898_v63, %v396_v41 }
 0x154   :  { %v1184_v26 = vsub.s32 %v234_v39, %v237_v62  ;;  %v409_v32 = vshrl.u32 %v900_v11, %v397_v46  ;;  %v1191_v23 = vsel %vm698_vm7, 0, %v697_v52  ;;  %v401_v33 = vor.u32 %v400_v17, %v399_v31 }
 0x155   :  { %v361_v10 = vmul.f32 %v360_v50, %v358_v15  ;;  %v408_v34 = vshll.u32 %v899_v7, %v396_v41  ;;  %v404_v61 = vor.u32 %v403_v19, %v402_v54  ;;  %v411_v4 = vshll.u32 %v900_v11, %v396_v41 }
 0x156   :  { %v240_v44 = vsub.s32 0, %v1184_v26  ;;  %v412_v36 = vshrl.u32 %v901_v18, %v397_v46  ;;  %v407_v37 = vor.u32 %v406_v47, %v405_v48  ;;  %v430_v12 = vshll.u32 %v390_v49, 8 }
 0x157   :  { %v362_v57 = vxor.u32 2147483648, %v361_v10  ;;  %v410_v38 = vor.u32 %v409_v32, %v408_v34  ;;  %v371_v7 = vadd.s32 3, %v367_v25  ;;  %v230_v43 = vadd.s32 %v1139_v40, %v1148_v22 }
 0x158   :  { %v684_v63 = vmin.u32 %v240_v44, %v1184_v26  ;;  %v413_v39 = vor.u32 %v412_v36, %v411_v4  ;;  %vm414_vm8 = vcmp.lt.s32.totalorder %v395_v30, 1  ;;  %v562_v11 = vsub.s32 4294967266, %v1191_v23 }
 0x159   :  { %v363_v53 = vsel %vm280_vm5, %v362_v57, %v361_v10  ;;  %v398_v18 = vshrl.u32 %v896_v58, %v397_v46  ;;  %vm417_vm9 = vcmp.lt.s32.totalorder %v395_v30, 4  ;;  %v422_v41 = vsel %vm414_vm8, %v401_v33, %v404_v61 }
 0x15a   :  { %v366_v60 = vsel %vm1171_vm6, %v1003_v20, %v363_v53  ;;  %v242_v45 = vclz %v684_v63  ;;  %vm416_vm10 = vcmp.lt.s32.totalorder %v395_v30, 3  ;;  %v419_v51 = vsel %vm417_vm9, %v407_v37, 2102212464 }
 0x15b   :  { %765 = vcosq.f32 %v366_v60  ;;  %v423_v52 = vsel %vm417_vm9, %v410_v38, 920167782  ;;  %vm415_vm11 = vcmp.lt.s32.totalorder %v395_v30, 2  ;;  %v418_v59 = vsel %vm414_vm8, %v398_v18, %v401_v33 }
 0x15c   :  { %767 = vsinq.f32 %v366_v60  ;;  %v685_v56 = vadd.s32 4294967294, %v242_v45  ;;  %v424_v14 = vsel %vm416_vm10, %v407_v37, %v423_v52  ;;  %v427_v15 = vsel %vm417_vm9, %v413_v39, 1326507024 }
 0x15d   :  { %v420_v40 = vsel %vm416_vm10, %v404_v61, %v419_v51  ;;  %v425_v22 = vsel %vm415_vm11, %v422_v41, %v424_v14  ;;  %v426_v50 = vsel %vm414_vm8, %v404_v61, %v407_v37  ;;  %v428_v58 = vsel %vm416_vm10, %v410_v38, %v427_v15 }
 0x15e   :  { %vm686_vm12 = vcmp.lt.s32.totalorder %v685_v56, 0  ;;  %v1211_v46 = vmul.u32.u64.low %v430_v12, %v425_v22  ;;  %v1212_v49 = vmul.u32.u64.high %v430_v12, %v425_v22, %v1211_v46  ;;  %v558_v17 = vsub.s32 32, %v1191_v23 }
 0x15f   :  { %v245_v62 = vsel %vm686_vm12, 0, %v685_v56  ;;  %v372_v25 = vand.u32 3, %v371_v7  ;;  %v563_v31 = vadd.s32 127, %v562_v11  ;;  %v421_v57 = vsel %vm415_vm11, %v418_v59, %v420_v40 }
 0x160   :  { %v246_v10 = vsub.s32 32, %v245_v62  ;;  %v250_v19 = vsub.s32 4294967266, %v245_v62  ;;  %v247_v47 = vshll.u32 %v1184_v26, %v245_v62  ;;  %v429_v54 = vsel %vm415_vm11, %v426_v50, %v428_v58 }
 0x161   :  { %v1219_v44 = vmul.u32.u64.low %v430_v12, %v429_v54  ;;  %v1220_v33 = vmul.u32.u64.high %v430_v12, %v429_v54, %v1219_v44  ;;  %v440_v53 = vadd.s32 1, %v1212_v49  ;;  %v560_v4 = vshrl.u32 %v1177_v16, %v558_v17 }
 0x162   :  { %v248_v48 = vshrl.u32 %v230_v43, %v246_v10  ;;  %v251_v32 = vadd.s32 127, %v250_v19  ;;  %vm370_vm13 = vweird.f32 %v1003_v20  ;;  %v564_v26 = vshll.u32 %v563_v31, 23 }
 0x163   :  { %v437_v63 = vmul.u32 %v430_v12, %v421_v57  ;;  %vm439_vm14 = vc.u32 %v1220_v33, %v1211_v46  ;;  %vm374_vm15 = vcmp.eq.s32.totalorder %v372_v25, 0  ;;  %vm377_vm0 = vcmp.eq.s32.totalorder %v372_v25, 2 }
 0x164   :  { %v249_v36 = vor.u32 %v248_v48, %v247_v47  ;;  %v252_v60 = vshll.u32 %v251_v32, 23  ;;  %v441_v39 = vsel %vm439_vm14, %v440_v53, %v1212_v49  ;;  %vm373_vm1 = vcmp.lt.s32.totalorder %v372_v25, 2 }
 0x165   :  { %v766_v34 = vpop.eup %765  ;;  %v442_v11 = vadd.s32 %v441_v39, %v437_v63  ;;  %v559_v41 = vshll.u32 %v1143_v55, %v1191_v23  ;;  %v565_v56 = vor.u32 4788187, %v564_v26  ;;  %vm176_vm2 = vcmp.lt.s32.totalorder %v1007_v24, 0 }
 0x166   :  { %v768_v61 = vpop.eup %767  ;;  %v378_v30 = vxor.u32 2147483648, %v766_v34  ;;  %v253_v38 = vor.u32 4788187, %v252_v60  ;;  %v256_v45 = vcvt.s32.f32 %v249_v36  ;;  %vm1240_vm3 = vcmp.le.f32.partialorder %v174_v29, 0.7853982 }
 0x167   :  { %v375_v37 = vxor.u32 2147483648, %v768_v61  ;;  %v443_v52 = vadd.s32 536870912, %v442_v11  ;;  %v561_v59 = vor.u32 %v560_v4, %v559_v41  ;;  %v566_v15 = vand.u32 2147483647, %v565_v56 }
 0x168   :  { %v379_v43 = vsel %vm377_vm0, %v378_v30, %v768_v61  ;;  %v254_v16 = vand.u32 2147483647, %v253_v38  ;;  %v260_v19 = vsub.s32 4, %v1167_v13  ;;  %vm488_vm4 = vcmp.lt.s32.totalorder %v1005_v21, 0 }
 0x169   :  { %v376_v7 = vsel %vm374_vm15, %v766_v34, %v375_v37  ;;  %v1234_v14 = vshrl.u32 %v443_v52, 30  ;;  %v568_v50 = vcvt.s32.f32 %v561_v59  ;;  %v438_v54 = vadd.s32 %v1211_v46, %v1220_v33 }
 0x16a   :  { %v380_v18 = vsel %vm373_vm1, %v376_v7, %v379_v43  ;;  %v257_v51 = vmul.f32 %v256_v45, %v254_v16  ;;  %v261_v47 = vsel %vm176_vm2, %v260_v19, %v1167_v13  ;;  %vm1256_vm6 = vcmp.le.f32.partialorder %v486_v27, 0.7853982 }
 0x16b   :  { %v1230_v12 = vsel %vm370_vm13, nan, %v380_v18  ;;  %v445_v22 = vshll.u32 %v1234_v14, 30  ;;  %v569_v20 = vmul.f32 %v568_v50, %v566_v15  ;;  %v263_v34 = vsel %vm1240_vm3, 0, %v261_v47 }
 0x16c   :  { %v258_v40 = vxor.u32 2147483648, %v257_v51  ;;  %v572_v13 = vsub.s32 4, %v1129_v42  ;;  %v613_v4 = vsub.f32 1.0, %v975_v0  ;;  %v614_v27 = vsub.f32 1.0, %v977_v1 }
 0x16d   :  { %v446_v62 = vsub.s32 %v442_v11, %v445_v22  ;;  %v570_v10 = vxor.u32 2147483648, %v569_v20  ;;  %v267_v26 = vadd.s32 3, %v263_v34  ;;  %v615_v39 = vsub.f32 1.0, %v985_v5 }
 0x16e   :  { %v259_v58 = vsel %vm176_vm2, %v258_v40, %v257_v51  ;;  %v573_v30 = vsel %vm488_vm4, %v572_v13, %v1129_v42  ;;  %v468_v16 = vsub.s32 4, %v1234_v14  ;;  %v616_v18 = vsub.f32 1.0, %v987_v6 }
 0x16f   :  { %v448_v49 = vsub.s32 0, %v446_v62  ;;  %v262_v17 = vsel %vm1240_vm3, %v1007_v24, %v259_v58  ;;  %v571_v29 = vsel %vm488_vm4, %v570_v10, %v569_v20  ;;  %v268_v45 = vand.u32 3, %v267_v26 }
 0x170   :  { %769 = vcosq.f32 %v262_v17  ;;  %v574_v53 = vsel %vm1256_vm6, %v1005_v21, %v571_v29  ;;  %v575_v11 = vsel %vm1256_vm6, 0, %v573_v30  ;;  %vm384_vm7 = vcmp.lt.s32.totalorder %v1019_v35, 0 }
 0x171   :  { %v692_v23 = vmin.u32 %v448_v49, %v446_v62  ;;  %771 = vsinq.f32 %v262_v17  ;;  %vm1288_vm8 = vcmp.le.f32.partialorder %v382_v28, 0.7853982  ;;  %v469_v15 = vsel %vm384_vm7, %v468_v16, %v1234_v14 }
 0x172   :  { %773 = vlog2.f32 %v979_v2  ;;  %vm270_vm9 = vcmp.eq.s32.totalorder %v268_v45, 0  ;;  %vm273_vm10 = vcmp.eq.s32.totalorder %v268_v45, 2  ;;  %v579_v22 = vadd.s32 3, %v575_v11 }
 0x173   :  { %v450_v25 = vclz %v692_v23  ;;  %775 = vlog2.f32 %v981_v3  ;;  %v594_v50 = vlaneseq  ;;  %v471_v14 = vsel %vm1288_vm8, 0, %v469_v15 }
 0x174   :  { %777 = vcosq.f32 %v574_v53  ;;  %vm269_vm11 = vcmp.lt.s32.totalorder %v268_v45, 2  ;;  %v580_v19 = vand.u32 3, %v579_v22  ;;  %vm266_vm12 = vweird.f32 %v1007_v24 }
 0x175   :  { %v693_v31 = vadd.s32 4294967294, %v450_v25  ;;  %779 = vsinq.f32 %v574_v53  ;;  %v475_v25 = vadd.s32 3, %v471_v14  ;;  %v591_v53 = vand.u32 2147483647, %v1230_v12 }
 0x176   :  { %781 = vlog2.f32 %v613_v4  ;;  %vm582_vm13 = vcmp.eq.s32.totalorder %v580_v19, 0  ;;  %vm585_vm14 = vcmp.eq.s32.totalorder %v580_v19, 2  ;;  %vm581_vm0 = vcmp.lt.s32.totalorder %v580_v19, 2 }
 0x177   :  { %vm694_vm5 = vcmp.lt.s32.totalorder %v693_v31, 0  ;;  %783 = vlog2.f32 %v614_v27  ;;  %vm578_vm3 = vweird.f32 %v1005_v21  ;;  %vm661_vm6 = vcmask 0  }
 0x178   :  { %v453_v57 = vsel %vm694_vm5, 0, %v693_v31  ;;  %785 = vlog2.f32 %v991_v8  ;;  %v1301_v31 = vand.u32 127, %v594_v50  ;;  %vm474_vm5 = vweird.f32 %v1019_v35 }
 0x179   :  { %v454_v48 = vsub.s32 32, %v453_v57  ;;  %v458_v32 = vsub.s32 4294967266, %v453_v57  ;;  %v455_v46 = vshll.u32 %v446_v62, %v453_v57  ;;  %787 = vlog2.f32 %v615_v39 }
 0x17a   :  { %v770_v63 = vpop.eup %769  ;;  %789 = vlog2.f32 %v993_v9  ;;  %vm596_vm15 = vcmp.lt.s32.totalorder %v1301_v31, 6 }
 0x17b   :  { %v456_v33 = vshrl.u32 %v438_v54, %v454_v48  ;;  %v459_v61 = vadd.s32 127, %v458_v32  ;;  %v772_v38 = vpop.eup %771  ;;  %v274_v56 = vxor.u32 2147483648, %v770_v63  ;;  %791 = vlog2.f32 %v616_v18 }
 0x17c   :  { %v271_v41 = vxor.u32 2147483648, %v772_v38  ;;  %v774_v51 = vpop.eup %773  ;;  %v598_v0 = vsel %vm596_vm15, %v591_v53, 0.0 }
 0x17d   :  { %v457_v36 = vor.u32 %v456_v33, %v455_v46  ;;  %v460_v60 = vshll.u32 %v459_v61, 23  ;;  %v776_v40 = vpop.eup %775  ;;  %v275_v49 = vsel %vm273_vm10, %v274_v56, %v772_v38  ;;  %v618_v29 = vmul.f32 0.6931472, %v774_v51 }
 0x17e   :  { %v778_v62 = vpop.eup %777  ;;  %v272_v58 = vsel %vm270_vm9, %v770_v63, %v271_v41  ;;  %v620_v54 = vmul.f32 0.6931472, %v776_v40  ;;  %v476_v46 = vand.u32 3, %v475_v25 }
 0x17f   :  { %v461_v37 = vor.u32 4788187, %v460_v60  ;;  %v464_v43 = vcvt.s32.f32 %v457_v36  ;;  %v780_v28 = vpop.eup %779  ;;  %v276_v10 = vsel %vm269_vm11, %v272_v58, %v275_v49  ;;  %v586_v57 = vxor.u32 2147483648, %v778_v62 }
 0x180   :  { %v782_v23 = vpop.eup %781  ;;  %v583_v47 = vxor.u32 2147483648, %v780_v28  ;;  %v277_v32 = vsel %vm266_vm12, nan, %v276_v10  ;;  %v625_v33 = vmul.f32 %v618_v29, %v613_v4  ;;  %vm481_vm1 = vcmp.eq.s32.totalorder %v476_v46, 2 }
 0x181   :  { %v462_v7 = vand.u32 2147483647, %v461_v37  ;;  %v784_v17 = vpop.eup %783  ;;  %v630_v44 = vmul.f32 0.6931472, %v782_v23  ;;  %v587_v36 = vsel %vm585_vm14, %v586_v57, %v780_v28  ;;  %v590_v60 = vand.u32 2147483647, %v277_v32 }
 0x182   :  { %v786_v48 = vpop.eup %785  ;;  %v632_v34 = vmul.f32 0.6931472, %v784_v17  ;;  %v584_v24 = vsel %vm582_vm13, %v778_v62, %v583_v47  ;;  %v626_v37 = vmul.f32 %v620_v54, %v614_v27  ;;  %vm478_vm2 = vcmp.eq.s32.totalorder %v476_v46, 0 }
 0x183   :  { %v465_v42 = vmul.f32 %v464_v43, %v462_v7  ;;  %v788_v13 = vpop.eup %787  ;;  %v622_v26 = vmul.f32 0.6931472, %v786_v48  ;;  %v637_v38 = vmul.f32 %v630_v44, %v979_v2  ;;  %v588_v43 = vsel %vm581_vm0, %v584_v24, %v587_v36 }
 0x184   :  { %v790_v61 = vpop.eup %789  ;;  %v634_v30 = vmul.f32 0.6931472, %v788_v13  ;;  %v638_v12 = vmul.f32 %v632_v34, %v981_v3  ;;  %v597_v11 = vsel %vm596_vm15, %v590_v60, 0.0  ;;  %vm477_vm4 = vcmp.lt.s32.totalorder %v476_v46, 2 }
 0x185   :  { %v466_v59 = vxor.u32 2147483648, %v465_v42  ;;  %v792_v63 = vpop.eup %791  ;;  %v624_v4 = vmul.f32 0.6931472, %v790_v61  ;;  %v627_v1 = vmul.f32 %v622_v26, %v615_v39  ;;  %v589_v52 = vsel %vm578_vm3, nan, %v588_v43 }
 0x186   :  { %v636_v27 = vmul.f32 0.6931472, %v792_v63  ;;  %v639_v3 = vmul.f32 %v634_v30, %v991_v8  ;;  %v642_v41 = vadd.f32 %v638_v12, %v626_v37  ;;  %v601_v15 = vadd.f32 %v598_v0, %v597_v11 }
 0x187   :  { %v467_v20 = vsel %vm384_vm7, %v466_v59, %v465_v42  ;;  %v641_v42 = vadd.f32 %v637_v38, %v625_v33  ;;  %v628_v5 = vmul.f32 %v624_v4, %v616_v18  ;;  %v593_v62 = vand.u32 2147483647, %v589_v52 }
 0x188   :  { %v470_v55 = vsel %vm1288_vm8, %v1019_v35, %v467_v20  ;;  %v640_v40 = vmul.f32 %v636_v27, %v993_v9  ;;  %v643_v8 = vadd.f32 %v639_v3, %v627_v1 }
 0x189   :  { %793 = vcosq.f32 %v470_v55  ;;  %v645_v22 = vadd.f32 %v642_v41, %v641_v42  ;;  %v600_v35 = vsel %vm596_vm15, %v593_v62, 0.0 }
 0x18a   :  { %795 = vsinq.f32 %v470_v55  ;;  %v644_v58 = vadd.f32 %v640_v40, %v628_v5 }
 0x18b   :  { %v646_v49 = vadd.f32 %v645_v22, %v643_v8 }
 0x18d   :  { %v647_v6 = vadd.f32 %v646_v49, %v644_v58 }
 0x193   :  { %v794_v7 = vpop.eup %793 }
 0x194   :  { %v796_v16 = vpop.eup %795  ;;  %v482_v45 = vxor.u32 2147483648, %v794_v7 }
 0x195   :  { %v479_v2 = vxor.u32 2147483648, %v796_v16 }
 0x196   :  { %v483_v56 = vsel %vm481_vm1, %v482_v45, %v796_v16 }
 0x197   :  { %v480_v51 = vsel %vm478_vm2, %v794_v7, %v479_v2 }
 0x198   :  { %v484_v59 = vsel %vm477_vm4, %v480_v51, %v483_v56 }
 0x199   :  { %v485_v39 = vsel %vm474_vm5, nan, %v484_v59 }
 0x19a   :  { %v592_v50 = vand.u32 2147483647, %v485_v39 }
 0x19c   :  { %v599_v21 = vsel %vm596_vm15, %v592_v50, 0.0 }
 0x19d   :  { %v602_v20 = vadd.f32 %v601_v15, %v599_v21 }
 0x19f   :  { %v603_v28 = vadd.f32 %v602_v20, %v600_v35 }
 0x1a1   :  { %604 = vadd.xlane.f32.xlu0 %v603_v28 }
 0x1a5   :  { %648 = vadd.xlane.f32.xlu0 %v647_v6 }
 0x22e   :  { %v605_v18 = vpop.xlane.xlu0 %604 }
 0x22f   :  { %v606_v55 = vrot.slane %v605_v18, 4 }
 0x231   :  { %v607_v9 = vadd.f32 %v606_v55, %v605_v18 }
 0x232   :  { %v649_v14 = vpop.xlane.xlu0 %648 }
 0x233   :  { %v608_v23 = vrot.slane %v607_v9, 2  ;;  %v650_v17 = vrot.slane %v649_v14, 4 }
 0x235   :  { %v651_v10 = vadd.f32 %v650_v17, %v649_v14  ;;  %v609_v19 = vadd.f32 %v608_v23, %v607_v9 }
 0x237   :  { %v652_v25 = vrot.slane %v651_v10, 2  ;;  %v610_v29 = vrot.slane %v609_v19, 1 }
 0x239   :  { %v653_v47 = vadd.f32 %v652_v25, %v651_v10  ;;  %v611_v57 = vadd.f32 %v610_v29, %v609_v19 }
 0x23b   :  { %749 = vpush %v611_v57  ;;  %v654_v54 = vrot.slane %v653_v47, 1 }
 0x23d   :  { %v655_v31 = vadd.f32 %v654_v54, %v653_v47 }
 0x23f   :  { %751 = vpush %v655_v31 }
 0x26c   :  { %s750_s2 = spop %749 }
 0x270   :  { %s752_s21 = spop %751 }
 0x271   :  { %s657_s22 = smul.f32 -0.0015625, %s752_s21 }
 0x273   :  { %s658_s23 = sadd.f32 %s750_s2, %s657_s22 }
 0x275   :  { %s659_s26 = smul.f32 0.33333334, %s658_s23 }
 0x277   :  { %v660_v48 = vstv %s659_s26 }
 0x278   :  { %662 = vst.msk [vmem:[#allocation8] sm:$0x1] %vm661_vm6, %v660_v48 }
 0x279   :  { %874 = shalt.err (!%p871_p0)
}
 0x27a   :  { %s875_s4 = scalar_lea.hbm %s1343_s3, 16 }
 0x27b   :  { %p876_p1 = scmp.ne.s32.totalorder %s1343_s3, %s875_s4  ;;  %p879_p2 = scmp.lt.u32.totalorder %s875_s4, %s1343_s3 }
 0x27d   :  { %p881_p3 = pnand %p879_p2, %p876_p1 }
 0x27f   :  { %884 = shalt.err (!%p881_p3)
}
 0x280   :  { %672 = dma.vmem_to_hbm [thread:$0]  %s670_s25, 16, %s1343_s3, [#allocation4]  }
 0x281   :  { %889 = dma.done.wait [#allocation4], 16  }
 0x282   :  { %890 = vsyncadd [#allocation4], 4294967280 }
 0x283   :  { %676 = vsyncpa [#allocation3], 1 }
 0x284   :  { %677 = vsyncpa [#allocation6], 1 }
 0x285   :  { %678 = vsyncpa [#allocation4], 1 }

</bundles_post_ra>
